<compile_context>
chip_gen: v5e
topology: v5e:2x2
jax: 0.10.0
libtpu: 0.0.40
codegen_flags: <defaults>
</compile_context>

<pallas_src>
import jax
import jax.numpy as jnp
from jax.experimental import pallas as pl
from jax.experimental.pallas import tpu as pltpu

_LANE = 128
_SUBLANE = 8
_SMALL_N_MAX = 32768  # single-block (no-grid) path: <= ~1 MiB in + 1 MiB out VMEM


def _logreg_kernel(wb_ref, x_ref, o_ref):
    # wb_ref: (2,) f32 in SMEM -> [weight, bias] scalars (cheap sreg reads).
    w = wb_ref[0]
    b = wb_ref[1]
    # VPU multiply-add; single EUP transcendental via tanh:
    #   sigmoid(z) = 0.5 * tanh(0.5 * z) + 0.5
    z = x_ref[...].astype(jnp.float32) * w + b
    o_ref[...] = (0.5 * jnp.tanh(0.5 * z) + 0.5).astype(o_ref.dtype)


def logistic_regression_forward(x, weight, bias, *, tile_rows=4096,
                                small_n_max=_SMALL_N_MAX):
    """x: (N, 1); weight: (1, 1); bias: (1,) -> (N, 1), same dtype as x."""
    n = x.shape[0]
    dtype = x.dtype

    # Two scalar parameters packed into one tiny SMEM array (always f32).
    wb = jnp.concatenate(
        [jnp.asarray(weight, jnp.float32).reshape(-1),
         jnp.asarray(bias, jnp.float32).reshape(-1)])  # (2,)

    # ---------------- small-N fast path: one block, no grid ----------------
    if n <= small_n_max:
        x_row = x.reshape(1, n)  # contiguous -> free metadata reshape
        out = pl.pallas_call(
            _logreg_kernel,
            out_shape=jax.ShapeDtypeStruct((1, n), dtype),
            in_specs=[
                pl.BlockSpec(memory_space=pltpu.MemorySpace.SMEM),  # wb scalars
                pl.BlockSpec(memory_space=pltpu.MemorySpace.VMEM),  # whole x
            ],
            out_specs=pl.BlockSpec(memory_space=pltpu.MemorySpace.VMEM),
            cost_estimate=pl.CostEstimate(
                flops=4 * n, transcendentals=n, bytes_accessed=2 * 4 * n),
        )(wb, x_row)
        return out.reshape(n, 1)

    # ---------------- large-N lane-dense tiled path ----------------
    # View (N, 1) as a (rows, 128) slab.  When N % 128 == 0 this is a free
    # metadata reshape (no pad pass and no output slice afterwards).
    n_lane_pad = (-n) % _LANE
    if n_lane_pad:
        x_flat = jnp.pad(x.reshape(-1), (0, n_lane_pad))  # only for ragged N
    else:
        x_flat = x.reshape(-1)
    rows = x_flat.shape[0] // _LANE
    x2d = x_flat.reshape(rows, _LANE)

    # Tile rows: multiple of 8 (sublane) unless the block spans the full dim.
    tile_rows = max(_SUBLANE, (tile_rows // _SUBLANE) * _SUBLANE)
    tile_rows_eff = tile_rows if rows >= tile_rows else rows
    grid = (pl.cdiv(rows, tile_rows_eff),)  # last block may be partial (masked)

    out2d = pl.pallas_call(
        _logreg_kernel,
        out_shape=jax.ShapeDtypeStruct((rows, _LANE), dtype),
        grid_spec=pl.GridSpec(
            grid=grid,
            in_specs=[
                # Scalars: whole array in SMEM, no VMEM tile / DMA.
                pl.BlockSpec(memory_space=pltpu.MemorySpace.SMEM),
                # Lane-dense 2 MiB row tiles, double-buffered over the grid.
                pl.BlockSpec((tile_rows_eff, _LANE), lambda i: (i, 0)),
            ],
            out_specs=pl.BlockSpec((tile_rows_eff, _LANE), lambda i: (i, 0)),
        ),
        compiler_params=pltpu.CompilerParams(
            dimension_semantics=("parallel",),  # shards tiles across TCs
        ),
        cost_estimate=pl.CostEstimate(
            flops=4 * rows * _LANE,
            transcendentals=rows * _LANE,
            bytes_accessed=2 * 4 * rows * _LANE,
        ),
    )(wb, x2d)

    y_flat = out2d.reshape(-1)
    if n_lane_pad:
        y_flat = y_flat[:n]  # slice only paid when N % 128 != 0
    return y_flat.reshape(n, 1)


if __name__ == "__main__":
    # Deterministic parameters (shapes from torch.nn.Linear(1, 1)).
    weight = jnp.array([[0.75]], dtype=jnp.float32)   # (out_features, in_features)
    bias = jnp.array([-1.5], dtype=jnp.float32)       # (out_features,)

    # Input mirroring the script: np.linspace(0, 10, 200) as a (200, 1) batch,
    # plus a tiny deterministic perturbation.
    key = jax.random.PRNGKey(0)
    n = 200
    x = jnp.linspace(0.0, 10.0, n, dtype=jnp.float32).reshape(n, 1)
    x = x + 0.01 * jax.random.normal(key, (n, 1), dtype=jnp.float32)

    # Small-N single-block path (the actual N=200 workload).
    y = logistic_regression_forward(x, weight, bias)
    jax.block_until_ready(y)
    y_ref = jax.nn.sigmoid(x @ weight.T + bias)
    assert y.shape == (n, 1)
    assert jnp.allclose(y, y_ref, atol=1e-6)

    # Also exercise the lane-dense tiled path at small shapes:
    #   (200, tr=8)  -> ragged N (pad path), single block
    #   (2560, tr=8) -> rows=20, grid=3, partial (masked) last block
    for n2, tr in ((200, 8), (2560, 8)):
        x2 = jnp.linspace(-5.0, 5.0, n2, dtype=jnp.float32).reshape(n2, 1)
        y2 = logistic_regression_forward(x2, weight, bias,
                                         tile_rows=tr, small_n_max=0)
        jax.block_until_ready(y2)
        y2_ref = jax.nn.sigmoid(x2 @ weight.T + bias)
        assert y2.shape == (n2, 1)
        assert jnp.allclose(y2, y2_ref, atol=1e-6)

    print("KERNEL_OK")
</pallas_src>

<mosaic_0001>
module attributes {stable_mosaic.version = 11 : i64} {
  func.func @_logreg_kernel(%arg0: memref<2xf32, #tpu.memory_space<smem>>, %arg1: memref<1x200xf32, #tpu.memory_space<vmem>>, %arg2: memref<1x200xf32, #tpu.memory_space<vmem>>) attributes {dimension_semantics = [], scalar_prefetch = 0 : i64, scratch_operands = 0 : i64, tpu.core_type = #tpu.core_type<tc>} {
    %c0 = arith.constant 0 : index
    %0 = memref.load %arg0[%c0] : memref<2xf32, #tpu.memory_space<smem>>
    %c1 = arith.constant 1 : index
    %1 = memref.load %arg0[%c1] : memref<2xf32, #tpu.memory_space<smem>>
    %c0_0 = arith.constant 0 : index
    %c0_1 = arith.constant 0 : index
    %2 = vector.load %arg1[%c0_0, %c0_1] : memref<1x200xf32, #tpu.memory_space<vmem>>, vector<1x200xf32>
    %3 = vector.broadcast %0 : f32 to vector<1x200xf32>
    %4 = arith.mulf %2, %3 : vector<1x200xf32>
    %5 = vector.broadcast %1 : f32 to vector<1x200xf32>
    %6 = arith.addf %4, %5 : vector<1x200xf32>
    %cst = arith.constant 5.000000e-01 : f32
    %7 = vector.broadcast %cst : f32 to vector<1x200xf32>
    %8 = arith.mulf %7, %6 : vector<1x200xf32>
    %9 = math.tanh %8 : vector<1x200xf32>
    %cst_2 = arith.constant 5.000000e-01 : f32
    %10 = vector.broadcast %cst_2 : f32 to vector<1x200xf32>
    %11 = arith.mulf %10, %9 : vector<1x200xf32>
    %cst_3 = arith.constant 5.000000e-01 : f32
    %12 = vector.broadcast %cst_3 : f32 to vector<1x200xf32>
    %13 = arith.addf %11, %12 : vector<1x200xf32>
    %c0_4 = arith.constant 0 : index
    %c0_5 = arith.constant 0 : index
    %14 = vector.load %arg2[%c0_4, %c0_5] : memref<1x200xf32, #tpu.memory_space<vmem>>, vector<1x200xf32>
    tpu.vector_store %arg2[%c0_4, %c0_5], %13 {strides = array<i32>} : memref<1x200xf32, #tpu.memory_space<vmem>>, vector<1x200xf32>,
    return
  }
}

</mosaic_0001>

<bundles_post_ra>
// kernel: tpu_custom_call.1
= control target key start
LH: loop header
LB: loop body
LE: loop exit
PB: predicated region body
PF: predicated region fallthrough
CT: control target
= control target key end

     0   :  { %7 = vsyncpa [#allocation5], 0  ;;  %s172_s0 = inlined_call_operand.hbm [shape: f32[2], index: 0, kind: input, shape index: {}]   ;;  %s173_s1 = inlined_call_operand.hbm [shape: f32[1,200], index: 1, kind: input, shape index: {}]   ;;  %s174_s2 = inlined_call_operand.hbm [shape: f32[1,200], index: 2, kind: output, shape index: {}]  }
   0x1   :  { %8 = vsyncpa [#allocation3], 0 }
   0x2   :  { %9 = vsyncpa [#allocation4], 0  ;;  %s15_s11 = sshll.u32 %s172_s0, 4  ;;  %s24_s14 = sshll.u32 %s173_s1, 4  ;;  %s16_s11 = int_to_ptr.hbm [resolvable:$true] %s15_s11  ;;  %s25_s14 = int_to_ptr.hbm [resolvable:$true] %s24_s14 }
   0x3   :  { %s145_s15 = smov [#allocation2]   ;;  %s146_s16 = smov [#allocation6]  }
   0x4   :  { %18 = dma.hbm_to_smem %s16_s11, 16, %s145_s15, [#allocation5]  }
   0x5   :  { %s26_s17 = sshll.u32 %s146_s16, 4  ;;  %s27_s17 = int_to_ptr.vmem [resolvable:$true] %s26_s17 }
   0x6   :  { %29 = dma.hbm_to_vmem [thread:$0]  %s25_s14, 32, %s27_s17, [#allocation3]  }
   0x7   :  { %139 = dma.done.wait [#allocation5], 16  }
   0x8   :  { %140 = vsyncadd [#allocation5], 4294967280 }
   0x9   :  { %141 = dma.done.wait [#allocation3], 32  }
   0xa   :  { %142 = vsyncadd [#allocation3], 4294967264 }
   0xb   :  { %38 = sfence }
   0xc   :  { %s39_s18 = sld [smem:[#allocation2]]  ;;  %v41_v0 = vld [vmem:[#allocation6] sm:$0x3]  ;;  %v50_v6 = vlaneseq  ;;  %s147_s0 = smov [#allocation7]  }
   0xd   :  { %s73_s19 = sld [smem:[#allocation2 + $0x1]]  ;;  %s60_s1 = sshll.u32 %s147_s0, 4  ;;  %s61_s1 = int_to_ptr.vmem [resolvable:$true] %s60_s1 }
   0xe   :  { %s62_s22 = sshll.u32 %s174_s2, 4  ;;  %vm52_vm0 = vcmp.lt.s32.totalorder %v50_v6, 200  ;;  %s63_s22 = int_to_ptr.hbm [resolvable:$true] %s62_s22 }
  0x12   :  { %v42_v1 = vstv %s39_s18 }
  0x13   :  { %v43_v2 = vmul.f32 %v42_v1, %v41_v0  ;;  %v44_v3 = vstv %s73_s19 }
  0x15   :  { %v45_v4 = vadd.f32 %v44_v3, %v43_v2 }
  0x17   :  { %v46_v5 = vmul.f32 0.5, %v45_v4 }
  0x19   :  { %77 = vtanh.f32 %v46_v5 }
  0x1f   :  { %v78_v7 = vpop.eup %77 }
  0x20   :  { %v48_v8 = vmul.f32 0.5, %v78_v7 }
  0x22   :  { %v49_v9 = vadd.f32 0.5, %v48_v8 }
  0x24   :  { %54 = vst.msk [vmem:[#allocation7] sm:$0x3] %vm52_vm0, %v49_v9 }
  0x25   :  { %65 = dma.vmem_to_hbm [thread:$0]  %s61_s1, 32, %s63_s22, [#allocation4]  }
  0x26   :  { %143 = dma.done.wait [#allocation4], 32  }
  0x27   :  { %144 = vsyncadd [#allocation4], 4294967264 }
  0x28   :  { %70 = vsyncpa [#allocation3], 1 }
  0x29   :  { %71 = vsyncpa [#allocation4], 1 }
  0x2a   :  { %72 = vsyncpa [#allocation5], 1 }

</bundles_post_ra>
